<compile_context>
chip_gen: v6e
topology: v6e:2x2x1
jax: 0.10.0
libtpu: 0.0.40
codegen_flags: <defaults>
</compile_context>

<pallas_src>
import functools
import math

import jax
import jax.numpy as jnp
from jax.experimental import pallas as pl
from jax.experimental.pallas import tpu as pltpu


INP_DIM = 4 + 4 + 1   # 9
NN_SIZE = 48
OUT_DIM = 1


def _has_bf16_eup():
    """bf16 tanh/VALU paths exist on v6e/v7x; v2-v5 need the f32 path."""
    try:
        kind = jax.devices()[0].device_kind.lower()
    except Exception:
        return False
    return not any(g in kind for g in ("v2", "v3", "v4", "v5"))


def _sigmoid_to_bf16(z, bf16_act):
    """sigmoid(z) = 0.5*(tanh(0.5*z)+1) -> bf16 (feeds the next bf16 matmul).

    bf16_act=True (v6e/v7x): tanh and the surrounding mul/add run in bf16.
    bf16_act=False (v5e):    f32 EUP tanh, then cast.
    """
    if bf16_act:
        zb = (0.5 * z).astype(jnp.bfloat16)
        return 0.5 * (jnp.tanh(zb) + 1.0)                      # stays bf16
    return (0.5 * (jnp.tanh(0.5 * z) + 1.0)).astype(jnp.bfloat16)


def _mlp_kernel(x_ref,
                w1_ref, b1_ref,
                w2_ref, b2_ref,
                w3_ref, b3_ref,
                w4_ref, b4_ref,
                o_ref, *, bf16_act):
    """One batch tile, feature-major (batch on lanes), entirely in VMEM.

    x_ref : (9, tile_b)  f32   lane-dense input slab
    w1    : (48, 9)  f32;  w2,w3: (48, 48) bf16;  w4: (1, 48) bf16   [(out,in)]
    b1-b3 : (48, 1)  f32;  b4: (1, 1) f32
    o_ref : (1, tile_b)  f32   lane-dense output row
    """
    x = x_ref[...]                                             # (9, tile_b) f32

    # fc1 in f32 (K=9 -> negligible MXU cost; keeps raw bbox coords exact).
    z = jnp.dot(w1_ref[...], x, preferred_element_type=jnp.float32) + b1_ref[...]
    h = _sigmoid_to_bf16(z, bf16_act)                          # (48, tile_b) bf16

    # fc2, fc3: bf16 MXU operands, f32 accumulate / bias.
    z = jnp.dot(w2_ref[...], h, preferred_element_type=jnp.float32) + b2_ref[...]
    h = _sigmoid_to_bf16(z, bf16_act)

    z = jnp.dot(w3_ref[...], h, preferred_element_type=jnp.float32) + b3_ref[...]
    h = _sigmoid_to_bf16(z, bf16_act)

    # fc4: plain (1,48)@(48,tile_b) matmul -> lane-dense (1, tile_b) row.
    z = jnp.dot(w4_ref[...], h, preferred_element_type=jnp.float32) + b4_ref[...]
    o_ref[...] = (0.5 * (jnp.tanh(0.5 * z) + 1.0)).astype(o_ref.dtype)


@functools.partial(jax.jit, static_argnames=("tile_b", "bf16_act"))
def bbox_classifier_forward(x, params, tile_b=1024, bf16_act=None):
    """x: (B, 9) float32.  params: PyTorch-layout w{i}:(out,in) f32, b{i}:(out,) f32.
    Returns (B, 1) float32."""
    B, D = x.shape
    assert D == INP_DIM
    assert tile_b % 128 == 0, "tile_b must be a multiple of the 128-lane width"
    if bf16_act is None:
        bf16_act = _has_bf16_eup()

    # Keep >= 2 grid steps when the batch allows it so the "parallel" grid axis
    # can shard across both v7x TensorCores (harmless on v5e/v6e).
    tb = tile_b
    while tb >= 512 and -(-B // tb) < 2:
        tb //= 2
    n_tiles = -(-B // tb)            # cdiv on static python ints
    B_pad = n_tiles * tb

    # Feature-major, lane-dense input slab: (9, B_pad) f32.  No bf16 cast here
    # (avoids an extra HBM pass); padded tail columns produce sigmoid(bias)
    # garbage that is sliced off below and never read.
    if B_pad != B:
        x = jnp.pad(x, ((0, B_pad - B), (0, 0)))
    x_t = x.T                                                  # (9, B_pad)

    bf = jnp.bfloat16
    w1 = params["w1"]                                          # (48, 9)  f32
    w2 = params["w2"].astype(bf)                               # (48, 48) bf16
    w3 = params["w3"].astype(bf)
    w4 = params["w4"].astype(bf)                               # (1, 48)  bf16
    b1 = params["b1"].reshape(-1, 1)                           # (48, 1)  f32
    b2 = params["b2"].reshape(-1, 1)
    b3 = params["b3"].reshape(-1, 1)
    b4 = params["b4"].reshape(1, 1)                            # (1, 1)   f32

    # Constant block index -> these stay resident in VMEM across the grid
    # (no per-step re-DMA); they are tiny so buffer overhead is noise.
    def resident(shape):
        return pl.BlockSpec(shape, lambda i: (0, 0))

    out_row = pl.pallas_call(
        functools.partial(_mlp_kernel, bf16_act=bf16_act),
        out_shape=jax.ShapeDtypeStruct((1, B_pad), jnp.float32),
        grid_spec=pltpu.PrefetchScalarGridSpec(
            num_scalar_prefetch=0,
            grid=(n_tiles,),
            in_specs=[
                pl.BlockSpec((INP_DIM, tb), lambda i: (0, i)),   # x slab
                resident(w1.shape), resident(b1.shape),
                resident(w2.shape), resident(b2.shape),
                resident(w3.shape), resident(b3.shape),
                resident(w4.shape), resident(b4.shape),
            ],
            # Lane-dense output: each grid step writes a tb-lane row chunk.
            out_specs=pl.BlockSpec((1, tb), lambda i: (0, i)),
        ),
        compiler_params=pltpu.CompilerParams(
            dimension_semantics=("parallel",)),
    )(x_t, w1, b1, w2, b2, w3, b3, w4, b4)

    # Undo the lane-dense layout: (1, B_pad) -> (B, 1).
    return out_row.reshape(-1)[:B][:, None]


def init_params(key, nn_size=NN_SIZE, inp_dim=INP_DIM, out_dim=OUT_DIM):
    """nn.Linear-style params: w (out,in), b (out,), U(-1/sqrt(fan_in), 1/sqrt(fan_in))."""
    dims = [(nn_size, inp_dim), (nn_size, nn_size), (nn_size, nn_size), (out_dim, nn_size)]
    params = {}
    for idx, (fan_out, fan_in) in enumerate(dims, start=1):
        key, kw, kb = jax.random.split(key, 3)
        bound = 1.0 / math.sqrt(fan_in)
        params[f"w{idx}"] = jax.random.uniform(
            kw, (fan_out, fan_in), jnp.float32, -bound, bound)
        params[f"b{idx}"] = jax.random.uniform(
            kb, (fan_out,), jnp.float32, -bound, bound)
    return params


def reference_f32(x, params):
    """Pure-f32 semantics of the PyTorch module (F.linear = x @ W.T + b)."""
    h = x
    for i in (1, 2, 3, 4):
        h = jax.nn.sigmoid(h @ params[f"w{i}"].T + params[f"b{i}"])
    return h


def reference_mirrored(x, params, bf16_act=None):
    """Mirror of the kernel numerics: f32 fc1, bf16 fc2-4 operands with f32
    accumulation, tanh-based sigmoid (bf16 on v6e/v7x)."""
    if bf16_act is None:
        bf16_act = _has_bf16_eup()
    bf = jnp.bfloat16
    z = jnp.dot(x, params["w1"].T,
                precision=jax.lax.Precision.HIGHEST) + params["b1"]
    h = _sigmoid_to_bf16(z, bf16_act)
    for i in (2, 3):
        z = jnp.dot(h, params[f"w{i}"].astype(bf).T,
                    preferred_element_type=jnp.float32) + params[f"b{i}"]
        h = _sigmoid_to_bf16(z, bf16_act)
    z = jnp.dot(h, params["w4"].astype(bf).T,
                preferred_element_type=jnp.float32) + params["b4"]
    return 0.5 * (jnp.tanh(0.5 * z) + 1.0)


if __name__ == "__main__":
    key = jax.random.PRNGKey(0)
    kx, kx2, kp = jax.random.split(key, 3)
    params = init_params(kp)

    # Batch that splits into >= 2 tiles (tile_b auto-halves 1024 -> 256 here,
    # keeping both v7x TensorCores busy).
    B = 512
    x = jax.random.normal(kx, (B, INP_DIM), jnp.float32)
    out = jax.block_until_ready(bbox_classifier_forward(x, params))
    assert out.shape == (B, OUT_DIM)
    assert jnp.allclose(out, reference_mirrored(x, params), atol=5e-3, rtol=0), \
        "mismatch vs kernel-mirrored reference"
    assert jnp.allclose(out, reference_f32(x, params), atol=2e-2, rtol=0), \
        "mismatch vs f32 reference"

    # Ragged batch: wrapper pads to a tile multiple and slices back.
    B2 = 300
    x2 = jax.random.normal(kx2, (B2, INP_DIM), jnp.float32)
    out2 = jax.block_until_ready(bbox_classifier_forward(x2, params))
    assert out2.shape == (B2, OUT_DIM)
    assert jnp.allclose(out2, reference_f32(x2, params), atol=2e-2, rtol=0), \
        "mismatch vs f32 reference (padded batch)"

    print("KERNEL_OK")
</pallas_src>

<mosaic_0001>
module attributes {stable_mosaic.version = 11 : i64} {
  func.func @_mlp_kernel(%arg0: i32, %arg1: memref<9x256xf32, #tpu.memory_space<vmem>>, %arg2: memref<48x9xf32, #tpu.memory_space<vmem>>, %arg3: memref<48x1xf32, #tpu.memory_space<vmem>>, %arg4: memref<48x48xbf16, #tpu.memory_space<vmem>>, %arg5: memref<48x1xf32, #tpu.memory_space<vmem>>, %arg6: memref<48x48xbf16, #tpu.memory_space<vmem>>, %arg7: memref<48x1xf32, #tpu.memory_space<vmem>>, %arg8: memref<1x48xbf16, #tpu.memory_space<vmem>>, %arg9: memref<1x1xf32, #tpu.memory_space<vmem>>, %arg10: memref<1x256xf32, #tpu.memory_space<vmem>>) attributes {dimension_semantics = [#tpu.dimension_semantics<parallel>], iteration_bounds = array<i64: 2>, scalar_prefetch = 0 : i64, scratch_operands = 0 : i64, tpu.core_type = #tpu.core_type<tc>, window_params = [{transform_indices = @transform_0, window_bounds = array<i64: 9, 256>}, {pipeline_mode = #tpu.pipeline_mode<synchronous>, transform_indices = @transform_1, window_bounds = array<i64: 48, 9>}, {pipeline_mode = #tpu.pipeline_mode<synchronous>, transform_indices = @transform_2, window_bounds = array<i64: 48, 1>}, {pipeline_mode = #tpu.pipeline_mode<synchronous>, transform_indices = @transform_3, window_bounds = array<i64: 48, 48>}, {pipeline_mode = #tpu.pipeline_mode<synchronous>, transform_indices = @transform_4, window_bounds = array<i64: 48, 1>}, {pipeline_mode = #tpu.pipeline_mode<synchronous>, transform_indices = @transform_5, window_bounds = array<i64: 48, 48>}, {pipeline_mode = #tpu.pipeline_mode<synchronous>, transform_indices = @transform_6, window_bounds = array<i64: 48, 1>}, {pipeline_mode = #tpu.pipeline_mode<synchronous>, transform_indices = @transform_7, window_bounds = array<i64: 1, 48>}, {pipeline_mode = #tpu.pipeline_mode<synchronous>, transform_indices = @transform_8, window_bounds = array<i64: 1, 1>}, {transform_indices = @transform_9, window_bounds = array<i64: 1, 256>}]} {
    %c0 = arith.constant 0 : index
    %c0_0 = arith.constant 0 : index
    %0 = vector.load %arg1[%c0, %c0_0] : memref<9x256xf32, #tpu.memory_space<vmem>>, vector<9x256xf32>
    %c0_1 = arith.constant 0 : index
    %c0_2 = arith.constant 0 : index
    %1 = vector.load %arg2[%c0_1, %c0_2] : memref<48x9xf32, #tpu.memory_space<vmem>>, vector<48x9xf32>
    %cst = arith.constant dense<0.000000e+00> : vector<48x256xf32>
    %2 = tpu.matmul %1, %0, %cst {dimension_numbers = #tpu.dot_dimension_numbers<[1], [0], [0], [1], [0, 0, 1, 1], [], []>} : vector<48x9xf32>, vector<9x256xf32>, vector<48x256xf32> -> vector<48x256xf32>
    %c0_3 = arith.constant 0 : index
    %c0_4 = arith.constant 0 : index
    %3 = vector.load %arg3[%c0_3, %c0_4] : memref<48x1xf32, #tpu.memory_space<vmem>>, vector<48x1xf32>
    %4 = vector.broadcast %3 : vector<48x1xf32> to vector<48x256xf32>
    %5 = arith.addf %2, %4 : vector<48x256xf32>
    %cst_5 = arith.constant 5.000000e-01 : f32
    %6 = vector.broadcast %cst_5 : f32 to vector<48x256xf32>
    %7 = arith.mulf %6, %5 : vector<48x256xf32>
    %8 = arith.truncf %7 : vector<48x256xf32> to vector<48x256xbf16>
    %9 = math.tanh %8 : vector<48x256xbf16>
    %cst_6 = arith.constant 1.000000e+00 : bf16
    %10 = vector.broadcast %cst_6 : bf16 to vector<48x256xbf16>
    %11 = arith.addf %9, %10 : vector<48x256xbf16>
    %cst_7 = arith.constant 5.000000e-01 : bf16
    %12 = vector.broadcast %cst_7 : bf16 to vector<48x256xbf16>
    %13 = arith.mulf %12, %11 : vector<48x256xbf16>
    %c0_8 = arith.constant 0 : index
    %c0_9 = arith.constant 0 : index
    %14 = vector.load %arg4[%c0_8, %c0_9] : memref<48x48xbf16, #tpu.memory_space<vmem>>, vector<48x48xbf16>
    %cst_10 = arith.constant dense<0.000000e+00> : vector<48x256xf32>
    %15 = tpu.matmul %14, %13, %cst_10 {dimension_numbers = #tpu.dot_dimension_numbers<[1], [0], [0], [1], [0, 0, 1, 1], [], []>} : vector<48x48xbf16>, vector<48x256xbf16>, vector<48x256xf32> -> vector<48x256xf32>
    %c0_11 = arith.constant 0 : index
    %c0_12 = arith.constant 0 : index
    %16 = vector.load %arg5[%c0_11, %c0_12] : memref<48x1xf32, #tpu.memory_space<vmem>>, vector<48x1xf32>
    %17 = vector.broadcast %16 : vector<48x1xf32> to vector<48x256xf32>
    %18 = arith.addf %15, %17 : vector<48x256xf32>
    %cst_13 = arith.constant 5.000000e-01 : f32
    %19 = vector.broadcast %cst_13 : f32 to vector<48x256xf32>
    %20 = arith.mulf %19, %18 : vector<48x256xf32>
    %21 = arith.truncf %20 : vector<48x256xf32> to vector<48x256xbf16>
    %22 = math.tanh %21 : vector<48x256xbf16>
    %cst_14 = arith.constant 1.000000e+00 : bf16
    %23 = vector.broadcast %cst_14 : bf16 to vector<48x256xbf16>
    %24 = arith.addf %22, %23 : vector<48x256xbf16>
    %cst_15 = arith.constant 5.000000e-01 : bf16
    %25 = vector.broadcast %cst_15 : bf16 to vector<48x256xbf16>
    %26 = arith.mulf %25, %24 : vector<48x256xbf16>
    %c0_16 = arith.constant 0 : index
    %c0_17 = arith.constant 0 : index
    %27 = vector.load %arg6[%c0_16, %c0_17] : memref<48x48xbf16, #tpu.memory_space<vmem>>, vector<48x48xbf16>
    %cst_18 = arith.constant dense<0.000000e+00> : vector<48x256xf32>
    %28 = tpu.matmul %27, %26, %cst_18 {dimension_numbers = #tpu.dot_dimension_numbers<[1], [0], [0], [1], [0, 0, 1, 1], [], []>} : vector<48x48xbf16>, vector<48x256xbf16>, vector<48x256xf32> -> vector<48x256xf32>
    %c0_19 = arith.constant 0 : index
    %c0_20 = arith.constant 0 : index
    %29 = vector.load %arg7[%c0_19, %c0_20] : memref<48x1xf32, #tpu.memory_space<vmem>>, vector<48x1xf32>
    %30 = vector.broadcast %29 : vector<48x1xf32> to vector<48x256xf32>
    %31 = arith.addf %28, %30 : vector<48x256xf32>
    %cst_21 = arith.constant 5.000000e-01 : f32
    %32 = vector.broadcast %cst_21 : f32 to vector<48x256xf32>
    %33 = arith.mulf %32, %31 : vector<48x256xf32>
    %34 = arith.truncf %33 : vector<48x256xf32> to vector<48x256xbf16>
    %35 = math.tanh %34 : vector<48x256xbf16>
    %cst_22 = arith.constant 1.000000e+00 : bf16
    %36 = vector.broadcast %cst_22 : bf16 to vector<48x256xbf16>
    %37 = arith.addf %35, %36 : vector<48x256xbf16>
    %cst_23 = arith.constant 5.000000e-01 : bf16
    %38 = vector.broadcast %cst_23 : bf16 to vector<48x256xbf16>
    %39 = arith.mulf %38, %37 : vector<48x256xbf16>
    %c0_24 = arith.constant 0 : index
    %c0_25 = arith.constant 0 : index
    %40 = vector.load %arg8[%c0_24, %c0_25] : memref<1x48xbf16, #tpu.memory_space<vmem>>, vector<1x48xbf16>
    %cst_26 = arith.constant dense<0.000000e+00> : vector<1x256xf32>
    %41 = tpu.matmul %40, %39, %cst_26 {dimension_numbers = #tpu.dot_dimension_numbers<[1], [0], [0], [1], [0, 0, 1, 1], [], []>} : vector<1x48xbf16>, vector<48x256xbf16>, vector<1x256xf32> -> vector<1x256xf32>
    %c0_27 = arith.constant 0 : index
    %c0_28 = arith.constant 0 : index
    %42 = vector.load %arg9[%c0_27, %c0_28] : memref<1x1xf32, #tpu.memory_space<vmem>>, vector<1x1xf32>
    %43 = vector.broadcast %42 : vector<1x1xf32> to vector<1x256xf32>
    %44 = arith.addf %41, %43 : vector<1x256xf32>
    %cst_29 = arith.constant 5.000000e-01 : f32
    %45 = vector.broadcast %cst_29 : f32 to vector<1x256xf32>
    %46 = arith.mulf %45, %44 : vector<1x256xf32>
    %47 = math.tanh %46 : vector<1x256xf32>
    %cst_30 = arith.constant 1.000000e+00 : f32
    %48 = vector.broadcast %cst_30 : f32 to vector<1x256xf32>
    %49 = arith.addf %47, %48 : vector<1x256xf32>
    %cst_31 = arith.constant 5.000000e-01 : f32
    %50 = vector.broadcast %cst_31 : f32 to vector<1x256xf32>
    %51 = arith.mulf %50, %49 : vector<1x256xf32>
    %c0_32 = arith.constant 0 : index
    %c0_33 = arith.constant 0 : index
    %52 = vector.load %arg10[%c0_32, %c0_33] : memref<1x256xf32, #tpu.memory_space<vmem>>, vector<1x256xf32>
    tpu.vector_store %arg10[%c0_32, %c0_33], %51 {strides = array<i32>} : memref<1x256xf32, #tpu.memory_space<vmem>>, vector<1x256xf32>,
    return
  }
  func.func @transform_0(%arg0: i32) -> (i32, i32) {
    %c0_i32 = arith.constant 0 : i32
    %c0_i32_0 = arith.constant 0 : i32
    return %c0_i32, %arg0 : i32, i32
  }
  func.func @transform_1(%arg0: i32) -> (i32, i32) {
    %c0_i32 = arith.constant 0 : i32
    %c0_i32_0 = arith.constant 0 : i32
    %c0_i32_1 = arith.constant 0 : i32
    return %c0_i32, %c0_i32_0 : i32, i32
  }
  func.func @transform_2(%arg0: i32) -> (i32, i32) {
    %c0_i32 = arith.constant 0 : i32
    %c0_i32_0 = arith.constant 0 : i32
    %c0_i32_1 = arith.constant 0 : i32
    return %c0_i32, %c0_i32_0 : i32, i32
  }
  func.func @transform_3(%arg0: i32) -> (i32, i32) {
    %c0_i32 = arith.constant 0 : i32
    %c0_i32_0 = arith.constant 0 : i32
    %c0_i32_1 = arith.constant 0 : i32
    return %c0_i32, %c0_i32_0 : i32, i32
  }
  func.func @transform_4(%arg0: i32) -> (i32, i32) {
    %c0_i32 = arith.constant 0 : i32
    %c0_i32_0 = arith.constant 0 : i32
    %c0_i32_1 = arith.constant 0 : i32
    return %c0_i32, %c0_i32_0 : i32, i32
  }
  func.func @transform_5(%arg0: i32) -> (i32, i32) {
    %c0_i32 = arith.constant 0 : i32
    %c0_i32_0 = arith.constant 0 : i32
    %c0_i32_1 = arith.constant 0 : i32
    return %c0_i32, %c0_i32_0 : i32, i32
  }
  func.func @transform_6(%arg0: i32) -> (i32, i32) {
    %c0_i32 = arith.constant 0 : i32
    %c0_i32_0 = arith.constant 0 : i32
    %c0_i32_1 = arith.constant 0 : i32
    return %c0_i32, %c0_i32_0 : i32, i32
  }
  func.func @transform_7(%arg0: i32) -> (i32, i32) {
    %c0_i32 = arith.constant 0 : i32
    %c0_i32_0 = arith.constant 0 : i32
    %c0_i32_1 = arith.constant 0 : i32
    return %c0_i32, %c0_i32_0 : i32, i32
  }
  func.func @transform_8(%arg0: i32) -> (i32, i32) {
    %c0_i32 = arith.constant 0 : i32
    %c0_i32_0 = arith.constant 0 : i32
    %c0_i32_1 = arith.constant 0 : i32
    return %c0_i32, %c0_i32_0 : i32, i32
  }
  func.func @transform_9(%arg0: i32) -> (i32, i32) {
    %c0_i32 = arith.constant 0 : i32
    %c0_i32_0 = arith.constant 0 : i32
    return %c0_i32, %arg0 : i32, i32
  }
}

</mosaic_0001>

<bundles_post_ra>
// kernel: bbox_classifier_forward.1
= control target key start
LH: loop header
LB: loop body
LE: loop exit
PB: predicated region body
PF: predicated region fallthrough
CT: control target
= control target key end

     0   :  { %s1536_s0 = inlined_call_operand.vmem [shape: f32[9,512], index: 0, kind: input, shape index: {}]   ;;  %s1537_s1 = inlined_call_operand.vmem [shape: f32[48,9], index: 1, kind: input, shape index: {}]   ;;  %s1538_s2 = inlined_call_operand.vmem [shape: f32[48,1], index: 2, kind: input, shape index: {}]   ;;  %s1539_s3 = inlined_call_operand.vmem [shape: bf16[48,48], index: 3, kind: input, shape index: {}]   ;;  %s1540_s4 = inlined_call_operand.vmem [shape: f32[48,1], index: 4, kind: input, shape index: {}]   ;;  %s1541_s5 = inlined_call_operand.vmem [shape: bf16[48,48], index: 5, kind: input, shape index: {}]   ;;  %s1542_s6 = inlined_call_operand.vmem [shape: f32[48,1], index: 6, kind: input, shape index: {}]   ;;  %s1543_s7 = inlined_call_operand.vmem [shape: bf16[1,48], index: 7, kind: input, shape index: {}]   ;;  %s1544_s8 = inlined_call_operand.<no memory space> [shape: f32[1,1], index: 8, kind: input, shape index: {}]   ;;  %s1545_s9 = inlined_call_operand.hbm [shape: f32[1,512], index: 9, kind: output, shape index: {}]  }
   0x1   :  { %v14_v0 = vstv %s1544_s8 }
   0x2   :  { %15 = vst [vmem:[#allocation2] sm:$0x1] %v14_v0 }
   0x3   :  { %16 = vsyncpa [#allocation5], 0 }
   0x4   :  { %18 = vsyncpa [#allocation5 + $0x1], 0  ;;  %s1320_s11 = smov 0   ;;  %s1322_s12 = smov 0  }
   0x5   :  { %s1324_s13 = smov 0   ;;  %s1326_s14 = smov 0  }
   0x6 LB: > { %s1069_s8 = sadd.s32 4294967295, %s1261_s14   ;;  %s1070_s15 = sadd.s32 4294967294, %s1261_s14   ;;  %s1261_s14 = sphi %s1326_s14, %s1553_s14   ;;  %s1257_s13 = sphi %s1324_s13, %s1552_s13   ;;  %s1253_s12 = sphi %s1322_s12, %s1551_s12   ;;  %s1249_s11 = sphi %s1320_s11, %s1550_s11  }
   0x7   : > { %s1343_s16 = sadd.s32 1, %s1261_s14   ;;  %s31_s17 = sadd.s32 1, %s1257_s13 }
   0x8   : > { %s28_s18 = ssub.s32 %s1261_s14, %s1343_s16  ;;  %p38_p0 = scmp.ne.s32.totalorder %s1257_s13, %s1253_s12 }
   0x9   : > { %p29_p1 = scmp.eq.s32.totalorder %s28_s18, 0  ;;  %p39_p2 = scmp.eq.s32.totalorder %s1261_s14, 0 }
   0xa   : > { %p236_p3 = scmp.eq.s32.totalorder %s1069_s8, 1  ;;  %p241_p4 = scmp.ne.s32.totalorder %s1253_s12, %s1249_s11 }
   0xb   : > { %s1356_s19 = scalar_select %p29_p1, %s1257_s13, %s31_s17  }
   0xc   : > { %p40_p5 = por %p39_p2, %p38_p0  ;;  %p1358_p6 = por %p236_p3, %p38_p0 }
   0xd   : > { %p242_p7 = scmp.eq.s32.totalorder %s1070_s15, 1  ;;  %p1546_p9 = scmp.ge.s32.totalorder %s1261_s14, 2 }
   0xf   : > { %p1362_p8 = por %p242_p7, %p241_p4  ;;  %282 = sbr.rel (%p1546_p9) target bundleno = 26 (0x1a), region = 48 }
  0x14   : > { %285 = sbr.rel (!%p40_p5) target bundleno = 26 (0x1a), region = 52  ;;  %s287_s22 = sand.u32 (%p40_p5), 1, %s1257_s13  }
  0x15   : > { %s1105_s23 = sshll.u32 (%p40_p5), %s1261_s14, 4  ;;  %s1073_s24 = sshll.u32 (%p40_p5), %s287_s22, 5 }
  0x16   : > { %s292_s27 = scalar_lea.vmem (%p40_p5), %s1536_s0, %s1105_s23  ;;  %s289_s28 = scalar_lea.vmem (%p40_p5), [#allocation3], %s1073_s24 }
  0x17   : > { %v305_v1 = vld [vmem:[%s292_s27] sm:$0xff] (%p40_p5)  ;;  %v307_v2 = vld [vmem:[%s292_s27 + $0x8] sm:$0xff] (%p40_p5) }
  0x18   : > { %v309_v3 = vld [vmem:[%s292_s27 + $0x20] sm:$0xff] (%p40_p5)  ;;  %306 = vst [vmem:[%s289_s28] sm:$0xff] (%p40_p5), %v305_v1  ;;  %308 = vst [vmem:[%s289_s28 + $0x8] sm:$0xff] (%p40_p5), %v307_v2  ;;  %v311_v4 = vld [vmem:[%s292_s27 + $0x28] sm:$0xff] (%p40_p5) }
  0x19   : > { %310 = vst [vmem:[%s289_s28 + $0x10] sm:$0xff] %v309_v3  ;;  %312 = vst [vmem:[%s289_s28 + $0x18] sm:$0xff] %v311_v4 }
  0x1a PF: > { %p1076_p10 = scmp.ge.s32.totalorder %s1261_s14, 1  ;;  %p317_p11 = scmp.lt.s32.totalorder %s1261_s14, 3 }
  0x1c   : > { %p318_p12 = pnand %p1076_p10, %p317_p11 }
  0x1d   : > { %s1377_s29 = sand.u32 (!%p318_p12), 1, %s1253_s12   ;;  %s1106_s22 = sshll.u32 (!%p318_p12), %s1069_s8, 5 }
  0x1e   : > { %321 = sbr.rel (%p318_p12) target bundleno = 1023 (0x3ff), region = 75  ;;  %s1077_s30 = sshll.u32 (!%p318_p12), %s1377_s29, 5 }
  0x1f   : > { %s326_s17 = scalar_lea.vmem (!%p318_p12), [#allocation3], %s1077_s30  ;;  %s1078_s18 = sshll.u32 (!%p318_p12), %s1377_s29, 1 }
  0x20   : > { %s358_s23 = scalar_lea.vmem (!%p318_p12), [#allocation4], %s1078_s18  ;;  %s1003_s27 = scalar_lea.hbm (!%p318_p12), %s1545_s9, %s1106_s22 }
  0x21   : > { %s1005_s24 = sshll.u32 (!%p318_p12), %s358_s23, 4  ;;  %s991_s28 = scalar_lea.sflag (!%p318_p12), [#allocation5], %s1377_s29  ;;  %s1006_s24 = int_to_ptr.vmem [resolvable:$true] %s1005_s24 }
  0x22   : > { %s1201_s30 = scalar_lea.vmem (!%p318_p12), %s1006_s24, 32  ;;  %s1266_s10 = smov (!%p318_p12), [#allocation4]  }
  0x23   : > { %vm429_vm0 = vcmask 1040384   ;;  %v1263_v5 = vmov 0.0   ;;  %v1264_v6 = vmov 0   ;;  %v378_v7 = vld [vmem:[%s1538_s2 + $0x20] sm:$0xff]  ;;  %v367_v8 = vld [vmem:[%s326_s17 + $0x18] sm:$0x1]  ;;  %p1202_p13 = scmp.ne.s32.totalorder %s1006_s24, %s1201_s30 }
  0x24   : > { %500 = vmatprep.mubr.f32.mxu0 %v1263_v5  ;;  %518 = vmatprep.mubr.f32.mxu1 %v1263_v5  ;;  %v366_v9 = vld [vmem:[%s326_s17 + $0x10] sm:$0x1]  ;;  %v365_v10 = vld [vmem:[%s326_s17 + $0x8] sm:$0xff]  ;;  %v364_v11 = vld [vmem:[%s326_s17] sm:$0xff]  ;;  %vm410_vm1 = vcmask 72704   ;;  %vm630_vm2 = vcmask 392192  }
  0x25   : > { %1153 = vset.pattern.permute.xlu0 %v1264_v6  ;;  %1154 = vset.pattern.permute.xlu1 %v1264_v6  ;;  %v368_v12 = vld [vmem:[%s1537_s1] sm:$0xff]  ;;  %v371_v13 = vld [vmem:[%s1537_s1 + $0x18] sm:$0xff]  ;;  %v379_v14 = vld [vmem:[%s1538_s2 + $0x28] sm:$0xff]  ;;  %p1203_p0 = pnand %p1202_p13, %p1358_p6  ;;  %s1205_s15 = sshll.u32 %s1266_s10, 4  ;;  %s1206_s15 = int_to_ptr.vmem [resolvable:$false] %s1205_s15 }
  0x26   : > { %402 = vperm.xlu0 %1153, %v378_v7   ;;  %1079 = vmatprep.subr.msk.mxu0 %vm429_vm0, %v367_v8  ;;  %v376_v15 = vld [vmem:[%s1538_s2 + $0x10] sm:$0xff]  ;;  %v369_v16 = vld [vmem:[%s1537_s1 + $0x8] sm:$0xff]  ;;  %v372_v17 = vld [vmem:[%s1537_s1 + $0x20] sm:$0xff]  ;;  %s1207_s8 = scalar_lea.vmem %s1206_s15, 64  ;;  %p1208_p2 = scmp.lt.s32.totalorder %s1006_s24, %s1206_s15 }
  0x27   : > { %1107 = vmatprep.subr.msk.mxu1 %vm429_vm0, %v367_v8  ;;  %1080 = vmatpush1.msk.msra.mxu0 %vm429_vm0, %v366_v9  ;;  %v374_v18 = vld [vmem:[%s1538_s2] sm:$0xff]  ;;  %v377_v19 = vld [vmem:[%s1538_s2 + $0x18] sm:$0xff]  ;;  %v370_v20 = vld [vmem:[%s1537_s1 + $0x10] sm:$0xff]  ;;  %p1204_p1 = pneg %p1203_p0  ;;  %p1209_p3 = scmp.lt.s32.totalorder %s1207_s8, %s1201_s30 }
  0x28   : > { %1109 = vmatpush1.msk.msra.mxu1 %vm429_vm0, %v366_v9  ;;  %466 = vmatprep.subr.mxu0 %v365_v10  ;;  %v373_v21 = vld [vmem:[%s1537_s1 + $0x28] sm:$0xff]  ;;  %v583_v22 = vld [vmem:[%s1540_s4 + $0x20] sm:$0xff]  ;;  %v581_v24 = vld [vmem:[%s1540_s4 + $0x10] sm:$0xff] }
  0x29   : > { %1108 = vmatprep.subr.mxu1 %v365_v10  ;;  %467 = vmatpush1.msra.mxu0 %v364_v11  ;;  %v375_v23 = vld [vmem:[%s1538_s2 + $0x8] sm:$0xff]  ;;  %v579_v26 = vld [vmem:[%s1540_s4] sm:$0xff]  ;;  %v582_v27 = vld [vmem:[%s1540_s4 + $0x18] sm:$0xff]  ;;  %p1210_p4 = por %p1209_p3, %p1208_p2 }
  0x2a   : > { %1110 = vmatpush1.msra.mxu1 %v364_v11  ;;  %1081 = vmatmul.mubr.msk.f32.vlgmr.msra.gmra.mxu0 %vm410_vm1, %v368_v12  ;;  %v584_v25 = vld [vmem:[%s1540_s4 + $0x28] sm:$0xff]  ;;  %v749_v28 = vld [vmem:[%s1542_s6 + $0x20] sm:$0xff]  ;;  %v747_v30 = vld [vmem:[%s1542_s6 + $0x10] sm:$0xff] }
  0x2b   : > { %1084 = vmatmul.mubr.msk.f32.vlgmr.msra.gmra.mxu1 %vm410_vm1, %v371_v13  ;;  %506 = vmatprep.mubr.f32.mxu0 %v1263_v5  ;;  %v580_v29 = vld [vmem:[%s1540_s4 + $0x8] sm:$0xff]  ;;  %v745_v32 = vld [vmem:[%s1542_s6] sm:$0xff]  ;;  %v748_v33 = vld [vmem:[%s1542_s6 + $0x18] sm:$0xff]  ;;  %p1211_p5 = pnand %p1210_p4, %p1204_p1 }
  0x2c   : > { %524 = vmatprep.mubr.f32.mxu1 %v1263_v5  ;;  %407 = vperm.xlu0 %1153, %v379_v14   ;;  %v750_v31 = vld [vmem:[%s1542_s6 + $0x28] sm:$0xff]  ;;  %v905_v34 = vld [vmem:[#allocation2] sm:$0x1] }
  0x2d   : > { %392 = vperm.xlu1 %1154, %v376_v15   ;;  %v746_v35 = vld [vmem:[%s1542_s6 + $0x8] sm:$0xff] }
  0x2e   : > { %1082 = vmatmul.mubr.msk.f32.gmra.mxu0 %vm410_vm1, %v369_v16 }
  0x2f   : > { %1085 = vmatmul.mubr.msk.f32.gmra.mxu1 %vm410_vm1, %v372_v17  ;;  %512 = vmatprep.mubr.f32.mxu0 %v1263_v5 }
  0x30   : > { %530 = vmatprep.mubr.f32.mxu1 %v1263_v5  ;;  %382 = vperm.xlu0 %1153, %v374_v18  }
  0x31   : > { %397 = vperm.xlu1 %1154, %v377_v19  }
  0x32   : > { %1083 = vmatmul.mubr.msk.f32.gmra.mxu0 %vm410_vm1, %v370_v20 }
  0x33   : > { %1086 = vmatmul.mubr.msk.f32.gmra.mxu1 %vm410_vm1, %v373_v21  ;;  %837 = vmatprep.mubr.bf16.mxu0 %v1264_v6 }
  0x34   : > { %672 = vmatprep.mubr.bf16.mxu1 %v1264_v6  ;;  %607 = vperm.xlu0 %1153, %v583_v22  }
  0x35   : > { %387 = vperm.xlu1 %1154, %v375_v23  }
  0x38   : > { %597 = vperm.xlu0 %1153, %v581_v24  }
  0x39   : > { %612 = vperm.xlu1 %1154, %v584_v25  }
  0x3c   : > { %587 = vperm.xlu0 %1153, %v579_v26  }
  0x3d   : > { %602 = vperm.xlu1 %1154, %v582_v27  }
  0x40   : > { %773 = vperm.xlu0 %1153, %v749_v28  }
  0x41   : > { %592 = vperm.xlu1 %1154, %v580_v29  }
  0x44   : > { %763 = vperm.xlu0 %1153, %v747_v30  }
  0x45   : > { %778 = vperm.xlu1 %1154, %v750_v31  }
  0x48   : > { %753 = vperm.xlu0 %1153, %v745_v32  }
  0x49   : > { %768 = vperm.xlu1 %1154, %v748_v33  }
  0x4c   : > { %908 = vperm.xlu0 %1153, %v905_v34  }
  0x4d   : > { %758 = vperm.xlu1 %1154, %v746_v35  }
  0xa1   : > { %v403_v37 = vpop.permute.xlu0 %402 }
  0xa7   : > { %v408_v43 = vpop.permute.xlu0 %407 }
  0xa8   : > { %v393_v36 = vpop.permute.xlu1 %392 }
  0xab   : > { %v383_v53 = vpop.permute.xlu0 %382 }
  0xac   : > { %v398_v40 = vpop.permute.xlu1 %397 }
  0xb0   : > { %v388_v48 = vpop.permute.xlu1 %387 }
  0xea   : > { %v502_v38 = vpop.f32.mrf.mxu0 }
  0xeb   : > { %v520_v39 = vpop.f32.mrf.mxu1  ;;  %v503_v62 = vadd.f32 %v502_v38, %v383_v53 }
  0xec   : > { %v504_v41 = vpop.f32.mrf.mxu0  ;;  %v521_v54 = vadd.f32 %v520_v39, %v398_v40  ;;  %v1155_v39 = vld [vmem:[%s1539_s3] sm:$0xff]  }
  0xed   : > { %v522_v42 = vpop.f32.mrf.mxu1  ;;  %v505_v57 = vadd.f32 %v504_v41, %v383_v53  ;;  %v537_v14 = vmul.f32 0.5, %v503_v62  ;;  %v1157_v41 = vld [vmem:[%s1539_s3 + $0x10] sm:$0xff]  }
  0xee   : > { %v508_v44 = vpop.f32.mrf.mxu0  ;;  %v523_v55 = vadd.f32 %v522_v42, %v398_v40  ;;  %v543_v7 = vmul.f32 0.5, %v521_v54  ;;  %v1156_v40 = vld [vmem:[%s1539_s3 + $0x8] sm:$0xff]  }
  0xef   : > { %v526_v45 = vpop.f32.mrf.mxu1  ;;  %v509_v63 = vadd.f32 %v508_v44, %v388_v48  ;;  %v538_v10 = vmul.f32 0.5, %v505_v57 }
  0xf0   : > { %v510_v46 = vpop.f32.mrf.mxu0  ;;  %v527_v49 = vadd.f32 %v526_v45, %v403_v37  ;;  %v544_v8 = vmul.f32 0.5, %v523_v55  ;;  %v613_v45 = vpop.permute.xlu1 %612 }
  0xf1   : > { %v528_v47 = vpop.f32.mrf.mxu1  ;;  %v511_v50 = vadd.f32 %v510_v46, %v388_v48  ;;  %v539_v15 = vmul.f32 0.5, %v509_v63 }
  0xf2   : > { %v514_v51 = vpop.f32.mrf.mxu0  ;;  %v529_v58 = vadd.f32 %v528_v47, %v403_v37  ;;  %v545_v2 = vmul.f32 0.5, %v527_v49  ;;  %v608_v47 = vpop.permute.xlu0 %607 }
  0xf3   : > { %v532_v52 = vpop.f32.mrf.mxu1  ;;  %v515_v56 = vadd.f32 %v514_v51, %v393_v36  ;;  %v540_v3 = vmul.f32 0.5, %v511_v50  ;;  %v549_v20 = vpack.c.bf16 %v539_v15, %v537_v14 }
  0xf4   : > { %v533_v59 = vadd.f32 %v532_v52, %v408_v43  ;;  %v516_v60 = vpop.f32.mrf.mxu0  ;;  %v546_v11 = vmul.f32 0.5, %v529_v58  ;;  %v603_v50 = vpop.permute.xlu1 %602 }
  0xf5   : > { %v534_v61 = vpop.f32.mrf.mxu1  ;;  %v541_v0 = vmul.f32 0.5, %v515_v56  ;;  %v517_v1 = vadd.f32 %v516_v60, %v393_v36  ;;  %v550_v18 = vpack.c.bf16 %v540_v3, %v538_v10 }
  0xf6   : > { %v547_v4 = vmul.f32 0.5, %v533_v59  ;;  %v535_v5 = vadd.f32 %v534_v61, %v408_v43  ;;  %v598_v52 = vpop.permute.xlu0 %597 }
  0xf7   : > { %v542_v9 = vmul.f32 0.5, %v517_v1  ;;  %v551_v16 = vpack.c.bf16 %v543_v7, %v541_v0 }
  0xf8   : > { %v553_v12 = vpack.c.bf16 %v547_v4, %v545_v2  ;;  %v548_v13 = vmul.f32 0.5, %v535_v5  ;;  %v593_v57 = vpop.permute.xlu1 %592 }
  0xf9   : > { %v552_v17 = vpack.c.bf16 %v544_v8, %v542_v9 }
  0xfa   : > { %1161 = vtanh.bf16 %v553_v12  ;;  %v554_v19 = vpack.c.bf16 %v548_v13, %v546_v11  ;;  %v588_v63 = vpop.permute.xlu0 %587 }
  0xfb   : > { %1163 = vtanh.bf16 %v552_v17 }
  0xfc   : > { %1165 = vtanh.bf16 %v554_v19 }
  0xfd   : > { %1167 = vtanh.bf16 %v551_v16 }
  0xfe   : > { %1169 = vtanh.bf16 %v550_v18 }
  0xff   : > { %1171 = vtanh.bf16 %v549_v20 }
 0x108   : > { %v1162_v21 = vpop.eup %1161 }
 0x109   : > { %v1164_v22 = vpop.eup %1163  ;;  %v565_v24 = vadd.bf16 1065369472, %v1162_v21 }
 0x10a   : > { %v1166_v23 = vpop.eup %1165  ;;  %v564_v27 = vadd.bf16 1065369472, %v1164_v22 }
 0x10b   : > { %v1168_v25 = vpop.eup %1167  ;;  %v566_v26 = vadd.bf16 1065369472, %v1166_v23  ;;  %v571_v31 = vmul.bf16 1056980736, %v565_v24 }
 0x10c   : > { %v1170_v28 = vpop.eup %1169  ;;  %v563_v30 = vadd.bf16 1065369472, %v1168_v25  ;;  %v570_v33 = vmul.bf16 1056980736, %v564_v27 }
 0x10d   : > { %v572_v29 = vmul.bf16 1056980736, %v566_v26  ;;  %v1172_v32 = vpop.eup %1171  ;;  %v562_v34 = vadd.bf16 1065369472, %v1170_v28 }
 0x10e   : > { %v561_v35 = vadd.bf16 1065369472, %v1172_v32  ;;  %v569_v36 = vmul.bf16 1056980736, %v563_v30 }
 0x10f   : > { %650 = vmatprep.subr.bf16.mxu1 %v572_v29  ;;  %v568_v37 = vmul.bf16 1056980736, %v562_v34 }
 0x110   : > { %651 = vmatpush1.bf16.msra.mxu1 %v571_v31  ;;  %v567_v38 = vmul.bf16 1056980736, %v561_v35 }
 0x111   : > { %652 = vmatprep.subr.bf16.mxu1 %v570_v33 }
 0x114   : > { %653 = vmatpush1.bf16.msra.mxu1 %v569_v36 }
 0x115   : > { %654 = vmatprep.subr.bf16.mxu1 %v568_v37 }
 0x118   : > { %655 = vmatpush1.bf16.msra.mxu1 %v567_v38 }
 0x11b   : > { %1090 = vmatmul.mubr.msk.bf16.vlgmr.msra.gmra.mxu1 %vm630_vm2, %v1155_v39 }
 0x11c   : > { %682 = vmatprep.mubr.bf16.mxu1 %v1264_v6 }
 0x123   : > { %1091 = vmatmul.mubr.msk.bf16.gmra.mxu1 %vm630_vm2, %v1156_v40 }
 0x124   : > { %692 = vmatprep.mubr.bf16.mxu1 %v1264_v6 }
 0x12b   : > { %1092 = vmatmul.mubr.msk.bf16.gmra.mxu1 %vm630_vm2, %v1157_v41 }
 0x12c   : > { %950 = vmatprep.mubr.bf16.mxu1 %v1264_v6 }
 0x1db   : > { %v674_v42 = vpop.f32.mrf.mxu1 }
 0x1dc   : > { %v675_v15 = vadd.f32 %v674_v42, %v588_v63 }
 0x1dd   : > { %v676_v43 = vpop.f32.mrf.mxu1 }
 0x1de   : > { %v677_v3 = vadd.f32 %v676_v43, %v588_v63  ;;  %v703_v25 = vmul.f32 0.5, %v675_v15 }
 0x1df   : > { %v678_v44 = vpop.f32.mrf.mxu1 }
 0x1e0   : > { %v679_v7 = vadd.f32 %v678_v44, %v593_v57  ;;  %v704_v17 = vmul.f32 0.5, %v677_v3 }
 0x1e1   : > { %v680_v46 = vpop.f32.mrf.mxu1 }
 0x1e2   : > { %v681_v61 = vadd.f32 %v680_v46, %v593_v57  ;;  %v705_v21 = vmul.f32 0.5, %v679_v7  ;;  %v1159_v46 = vld [vmem:[%s1541_s5 + $0x8] sm:$0xff]  }
 0x1e3   : > { %v684_v48 = vpop.f32.mrf.mxu1 }
 0x1e4   : > { %v685_v0 = vadd.f32 %v684_v48, %v598_v52  ;;  %v706_v11 = vmul.f32 0.5, %v681_v61  ;;  %v715_v26 = vpack.c.bf16 %v705_v21, %v703_v25 }
 0x1e5   : > { %v686_v49 = vpop.f32.mrf.mxu1 }
 0x1e6   : > { %v687_v55 = vadd.f32 %v686_v49, %v598_v52  ;;  %v707_v16 = vmul.f32 0.5, %v685_v0  ;;  %v716_v23 = vpack.c.bf16 %v706_v11, %v704_v17 }
 0x1e7   : > { %v688_v51 = vpop.f32.mrf.mxu1 }
 0x1e8   : > { %v689_v58 = vadd.f32 %v688_v51, %v603_v50  ;;  %v708_v1 = vmul.f32 0.5, %v687_v55  ;;  %v779_v51 = vpop.permute.xlu1 %778 }
 0x1e9   : > { %v690_v53 = vpop.f32.mrf.mxu1 }
 0x1ea   : > { %v691_v54 = vadd.f32 %v690_v53, %v603_v50  ;;  %v709_v8 = vmul.f32 0.5, %v689_v58  ;;  %v774_v53 = vpop.permute.xlu0 %773 }
 0x1eb   : > { %v694_v56 = vpop.f32.mrf.mxu1 }
 0x1ec   : > { %v710_v59 = vmul.f32 0.5, %v691_v54  ;;  %v695_v62 = vadd.f32 %v694_v56, %v608_v47  ;;  %v717_v22 = vpack.c.bf16 %v709_v8, %v707_v16  ;;  %v769_v56 = vpop.permute.xlu1 %768 }
 0x1ed   : > { %v696_v60 = vpop.f32.mrf.mxu1 }
 0x1ee   : > { %v697_v4 = vadd.f32 %v696_v60, %v608_v47  ;;  %v718_v9 = vpack.c.bf16 %v710_v59, %v708_v1  ;;  %v711_v12 = vmul.f32 0.5, %v695_v62  ;;  %v1160_v47 = vld [vmem:[%s1541_s5 + $0x10] sm:$0xff]   ;;  %v764_v58 = vpop.permute.xlu0 %763 }
 0x1ef   : > { %v698_v2 = vpop.f32.mrf.mxu1 }
 0x1f0   : > { %v699_v5 = vadd.f32 %v698_v2, %v613_v45  ;;  %v712_v18 = vmul.f32 0.5, %v697_v4  ;;  %1173 = vtanh.bf16 %v718_v9  ;;  %v759_v62 = vpop.permute.xlu1 %758 }
 0x1f1   : > { %v700_v10 = vpop.f32.mrf.mxu1 }
 0x1f2   : > { %v713_v13 = vmul.f32 0.5, %v699_v5  ;;  %v701_v14 = vadd.f32 %v700_v10, %v613_v45  ;;  %v1158_v45 = vld [vmem:[%s1541_s5] sm:$0xff]   ;;  %v754_v4 = vpop.permute.xlu0 %753 }
 0x1f4   : > { %v719_v19 = vpack.c.bf16 %v713_v13, %v711_v12  ;;  %v714_v20 = vmul.f32 0.5, %v701_v14 }
 0x1f6   : > { %1175 = vtanh.bf16 %v719_v19  ;;  %v720_v24 = vpack.c.bf16 %v714_v20, %v712_v18 }
 0x1f8   : > { %1177 = vtanh.bf16 %v720_v24 }
 0x1f9   : > { %1179 = vtanh.bf16 %v717_v22 }
 0x1fa   : > { %1181 = vtanh.bf16 %v716_v23 }
 0x1fb   : > { %1183 = vtanh.bf16 %v715_v26 }
 0x1fe   : > { %v1174_v27 = vpop.eup %1173 }
 0x1ff   : > { %v730_v33 = vadd.bf16 1065369472, %v1174_v27 }
 0x201   : > { %v736_v39 = vmul.bf16 1056980736, %v730_v33 }
 0x204   : > { %v1176_v28 = vpop.eup %1175 }
 0x205   : > { %v731_v30 = vadd.bf16 1065369472, %v1176_v28 }
 0x206   : > { %v1178_v29 = vpop.eup %1177 }
 0x207   : > { %v1180_v31 = vpop.eup %1179  ;;  %v732_v32 = vadd.bf16 1065369472, %v1178_v29  ;;  %v737_v37 = vmul.bf16 1056980736, %v731_v30 }
 0x208   : > { %v1182_v34 = vpop.eup %1181  ;;  %v729_v36 = vadd.bf16 1065369472, %v1180_v31 }
 0x209   : > { %v738_v35 = vmul.bf16 1056980736, %v732_v32  ;;  %v1184_v38 = vpop.eup %1183  ;;  %v728_v40 = vadd.bf16 1065369472, %v1182_v34 }
 0x20a   : > { %v727_v41 = vadd.bf16 1065369472, %v1184_v38  ;;  %v735_v42 = vmul.bf16 1056980736, %v729_v36 }
 0x20b   : > { %815 = vmatprep.subr.bf16.mxu0 %v738_v35  ;;  %v734_v43 = vmul.bf16 1056980736, %v728_v40 }
 0x20c   : > { %816 = vmatpush1.bf16.msra.mxu0 %v737_v37  ;;  %v733_v44 = vmul.bf16 1056980736, %v727_v41 }
 0x20d   : > { %817 = vmatprep.subr.bf16.mxu0 %v736_v39 }
 0x210   : > { %818 = vmatpush1.bf16.msra.mxu0 %v735_v42 }
 0x211   : > { %819 = vmatprep.subr.bf16.mxu0 %v734_v43 }
 0x214   : > { %820 = vmatpush1.bf16.msra.mxu0 %v733_v44 }
 0x217   : > { %1096 = vmatmul.mubr.msk.bf16.vlgmr.msra.gmra.mxu0 %vm630_vm2, %v1158_v45 }
 0x218   : > { %847 = vmatprep.mubr.bf16.mxu0 %v1264_v6 }
 0x21f   : > { %1097 = vmatmul.mubr.msk.bf16.gmra.mxu0 %vm630_vm2, %v1159_v46 }
 0x220   : > { %857 = vmatprep.mubr.bf16.mxu0 %v1264_v6 }
 0x227   : > { %1098 = vmatmul.mubr.msk.bf16.gmra.mxu0 %vm630_vm2, %v1160_v47 }
 0x2d7   : > { %v839_v48 = vpop.f32.mrf.mxu0 }
 0x2d8   : > { %v840_v20 = vadd.f32 %v839_v48, %v754_v4 }
 0x2d9   : > { %v841_v49 = vpop.f32.mrf.mxu0 }
 0x2da   : > { %v842_v9 = vadd.f32 %v841_v49, %v754_v4  ;;  %v868_v30 = vmul.f32 0.5, %v840_v20 }
 0x2db   : > { %v843_v50 = vpop.f32.mrf.mxu0 }
 0x2dc   : > { %v844_v12 = vadd.f32 %v843_v50, %v759_v62  ;;  %v869_v22 = vmul.f32 0.5, %v842_v9  ;;  %v904_v50 = vld [vmem:[%s1543_s7] sm:$0x1] }
 0x2dd   : > { %v845_v52 = vpop.f32.mrf.mxu0 }
 0x2de   : > { %v846_v2 = vadd.f32 %v845_v52, %v759_v62  ;;  %v870_v26 = vmul.f32 0.5, %v844_v12 }
 0x2df   : > { %v849_v54 = vpop.f32.mrf.mxu0 }
 0x2e0   : > { %v850_v5 = vadd.f32 %v849_v54, %v764_v58  ;;  %v871_v16 = vmul.f32 0.5, %v846_v2  ;;  %v880_v31 = vpack.c.bf16 %v870_v26, %v868_v30  ;;  %v909_v54 = vpop.permute.xlu0 %908 }
 0x2e1   : > { %v851_v55 = vpop.f32.mrf.mxu0 }
 0x2e2   : > { %v852_v6 = vadd.f32 %v851_v55, %v764_v58  ;;  %v872_v21 = vmul.f32 0.5, %v850_v5  ;;  %v881_v28 = vpack.c.bf16 %v871_v16, %v869_v22 }
 0x2e3   : > { %v853_v57 = vpop.f32.mrf.mxu0 }
 0x2e4   : > { %v854_v63 = vadd.f32 %v853_v57, %v769_v56  ;;  %v873_v7 = vmul.f32 0.5, %v852_v6 }
 0x2e5   : > { %v855_v59 = vpop.f32.mrf.mxu0 }
 0x2e6   : > { %v856_v60 = vadd.f32 %v855_v59, %v769_v56  ;;  %v874_v13 = vmul.f32 0.5, %v854_v63  ;;  %v1265_v63 = vmov 1966171168  }
 0x2e7   : > { %v859_v61 = vpop.f32.mrf.mxu0 }
 0x2e8   : > { %v875_v0 = vmul.f32 0.5, %v856_v60  ;;  %v860_v3 = vadd.f32 %v859_v61, %v774_v53  ;;  %v882_v27 = vpack.c.bf16 %v874_v13, %v872_v21 }
 0x2e9   : > { %v861_v1 = vpop.f32.mrf.mxu0 }
 0x2ea   : > { %v862_v10 = vadd.f32 %v861_v1, %v774_v53  ;;  %v883_v14 = vpack.c.bf16 %v875_v0, %v873_v7  ;;  %v876_v17 = vmul.f32 0.5, %v860_v3  ;;  %v971_v0 = vunpack.c.l.s4 %v1265_v63 }
 0x2eb   : > { %v863_v8 = vpop.f32.mrf.mxu0 }
 0x2ec   : > { %v864_v11 = vadd.f32 %v863_v8, %v779_v51  ;;  %v877_v23 = vmul.f32 0.5, %v862_v10  ;;  %1185 = vtanh.bf16 %v883_v14  ;;  %v972_v2 = vunpack.c.0.s8 %v971_v0 }
 0x2ed   : > { %v865_v15 = vpop.f32.mrf.mxu0 }
 0x2ee   : > { %v878_v18 = vmul.f32 0.5, %v864_v11  ;;  %v866_v19 = vadd.f32 %v865_v15, %v779_v51  ;;  %v911_v51 = vlaneseq }
 0x2f0   : > { %v884_v24 = vpack.c.bf16 %v878_v18, %v876_v17  ;;  %v879_v25 = vmul.f32 0.5, %v866_v19  ;;  %v912_v52 = vshrl.u32 %v911_v51, 7  ;;  %vm987_vm3 = vcmp.lt.s32.totalorder %v911_v51, 256 }
 0x2f2   : > { %1187 = vtanh.bf16 %v884_v24  ;;  %v885_v29 = vpack.c.bf16 %v879_v25, %v877_v23  ;;  %v913_v53 = vsub.s32 0, %v912_v52  ;;  %v975_v7 = vsub.s32 %v972_v2, %v912_v52 }
 0x2f4   : > { %1189 = vtanh.bf16 %v885_v29  ;;  %v914_v55 = vrot.slane %v909_v54, %v913_v53 }
 0x2f5   : > { %1191 = vtanh.bf16 %v882_v27 }
 0x2f6   : > { %1193 = vtanh.bf16 %v881_v28 }
 0x2f7   : > { %1195 = vtanh.bf16 %v880_v31 }
 0x2fa   : > { %v1186_v32 = vpop.eup %1185 }
 0x2fb   : > { %v895_v38 = vadd.bf16 1065369472, %v1186_v32 }
 0x2fd   : > { %v901_v44 = vmul.bf16 1056980736, %v895_v38 }
 0x300   : > { %v1188_v33 = vpop.eup %1187 }
 0x301   : > { %v896_v35 = vadd.bf16 1065369472, %v1188_v33 }
 0x302   : > { %v1190_v34 = vpop.eup %1189 }
 0x303   : > { %v1192_v36 = vpop.eup %1191  ;;  %v897_v37 = vadd.bf16 1065369472, %v1190_v34  ;;  %v902_v42 = vmul.bf16 1056980736, %v896_v35 }
 0x304   : > { %v1194_v39 = vpop.eup %1193  ;;  %v894_v41 = vadd.bf16 1065369472, %v1192_v36 }
 0x305   : > { %v903_v40 = vmul.bf16 1056980736, %v897_v37  ;;  %v1196_v43 = vpop.eup %1195  ;;  %v893_v45 = vadd.bf16 1065369472, %v1194_v39 }
 0x306   : > { %v892_v46 = vadd.bf16 1065369472, %v1196_v43  ;;  %v900_v47 = vmul.bf16 1056980736, %v894_v41 }
 0x307   : > { %928 = vmatprep.subr.bf16.mxu1 %v903_v40  ;;  %v899_v48 = vmul.bf16 1056980736, %v893_v45 }
 0x308   : > { %929 = vmatpush1.bf16.msra.mxu1 %v902_v42  ;;  %v898_v49 = vmul.bf16 1056980736, %v892_v46 }
 0x309   : > { %930 = vmatprep.subr.bf16.mxu1 %v901_v44 }
 0x30c   : > { %931 = vmatpush1.bf16.msra.mxu1 %v900_v47 }
 0x30d   : > { %932 = vmatprep.subr.bf16.mxu1 %v899_v48 }
 0x310   : > { %933 = vmatpush1.bf16.msra.mxu1 %v898_v49 }
 0x313   : > { %1099 = vmatmul.mubr.msk.bf16.vlgmr.msra.gmra.mxu1 %vm630_vm2, %v904_v50 }
 0x3d3   : > { %v952_v56 = vpop.f32.mrf.mxu1 }
 0x3d4   : > { %v953_v57 = vadd.f32 %v952_v56, %v914_v55 }
 0x3d5   : > { %v954_v58 = vpop.f32.mrf.mxu1 }
 0x3d6   : > { %v959_v59 = vmul.f32 0.5, %v953_v57  ;;  %v955_v60 = vadd.f32 %v954_v58, %v914_v55 }
 0x3d7   : > { %v956_v6 = vpop.f32.mrf.mxu1 }
 0x3d8   : > { %1197 = vtanh.f32 %v959_v59  ;;  %v960_v61 = vmul.f32 0.5, %v955_v60 }
 0x3d9   : > { %v957_v62 = vpop.f32.mrf.mxu1 }
 0x3da   : > { %1199 = vtanh.f32 %v960_v61 }
 0x3e5   : > { %v1198_v1 = vpop.eup %1197 }
 0x3e6   : > { %v963_v3 = vadd.f32 1.0, %v1198_v1 }
 0x3e7   : > { %v1200_v4 = vpop.eup %1199 }
 0x3e8   : > { %v964_v5 = vadd.f32 1.0, %v1200_v4  ;;  %v965_v8 = vmul.f32 0.5, %v963_v3 }
 0x3ea   : > { %v966_v9 = vmul.f32 0.5, %v964_v5 }
 0x3ec   : > { %v969_v10 = vcombine.low %v965_v8, %v966_v9 }
 0x3ee   : > { %v976_v11 = vrot.slane %v969_v10, %v975_v7 }
 0x3f0   : > { %v983_v12 = vrot.slane %v976_v11, %v975_v7 }
 0x3f2   : > { %989 = vst.msk [vmem:[%s358_s23] sm:$0x3] %vm987_vm3, %v983_v12 }
 0x3f3   : > { %1214 = shalt.err (!%p1211_p5)
}
 0x3f4   : > { %s1215_s17 = scalar_lea.hbm %s1003_s27, 32  ;;  %s1219_s22 = scalar_lea.hbm %s1545_s9, 64 }
 0x3f5   : > { %p1216_p7 = scmp.ne.s32.totalorder %s1003_s27, %s1215_s17  ;;  %p1220_p12 = scmp.lt.s32.totalorder %s1003_s27, %s1545_s9 }
 0x3f6   : > { %p1221_p13 = scmp.lt.s32.totalorder %s1219_s22, %s1215_s17 }
 0x3f7   : > { %p1217_p10 = pnand %p1216_p7, %p1358_p6 }
 0x3f8   : > { %p1222_p0 = por %p1221_p13, %p1220_p12 }
 0x3f9   : > { %p1218_p11 = pneg %p1217_p10 }
 0x3fb   : > { %p1223_p9 = pnand %p1222_p0, %p1218_p11 }
 0x3fd   : > { %1226 = shalt.err (!%p1223_p9)
}
 0x3fe   : > { %1111 = dma.vmem_to_hbm [thread:$0]  (%p1358_p6), %s1006_s24, 32, %s1003_s27, %s991_s28  }
 0x3ff PF: > { %s1017_s26 = sand.u32 1, %s1249_s11   ;;  %p1549_p1 = scmp.ge.s32.totalorder %s1261_s14, 2 }
 0x400   : > { %s1018_s30 = scalar_lea.sflag [#allocation5], %s1017_s26 }
 0x401   : > { %p1114_p2 = pnand %p1549_p1, %p1362_p8 }
 0x403   : > { %p1115_p3 = pneg %p1114_p2 }
 0x405   : > { %1244 = dma.done.wait (%p1115_p3), %s1018_s30, 32  }
 0x406   : > { %1246 = vsyncadd (%p1115_p3), %s1018_s30, 4294967264  ;;  %p21_p9 = scmp.ge.s32.totalorder %s1343_s16, 4   ;;  %s1550_s11 = smov %s1253_s12 }
 0x407   : > { %s1551_s12 = smov %s1257_s13  ;;  %s1552_s13 = smov %s1356_s19 }
 0x408   : > { %s1553_s14 = smov %s1343_s16  ;;  %23 = sbr.rel (!%p21_p9) target bundleno = 6 (0x6), region = 119 }
 0x40d   :  { %1023 = vsyncpa [#allocation5], 1 }
 0x40e   :  { %1025 = vsyncpa [#allocation5 + $0x1], 1 }

</bundles_post_ra>
